<compile_context>
chip_gen: v5e
topology: v5e:2x2
jax: 0.10.0
libtpu: 0.0.40
codegen_flags: <defaults>
</compile_context>

<pallas_src>
import functools

import jax
import jax.numpy as jnp
from jax.experimental import pallas as pl
from jax.experimental.pallas import tpu as pltpu


# ---------------------------------------------------------------------------
# Fused GENI forward kernel
# ---------------------------------------------------------------------------
def geni_kernel(x_ref, w1_ref, b1_ref, w2_ref, b2_ref, adj_ref,
                wsrc_ref, wdst_ref, c_ref, out_ref,
                *, num_layers, num_heads, n_edge_types):
    f32 = jnp.float32
    n = out_ref.shape[0]

    # --- 1. ScoringNetwork: Linear -> LeakyReLU(0.2) -> Linear --------------
    h = jnp.dot(x_ref[...], w1_ref[...], preferred_element_type=f32) + b1_ref[...]
    h = jnp.where(h > 0, h, 0.2 * h)
    s_col = jnp.dot(h, w2_ref[...], preferred_element_type=f32) + b2_ref[...]   # (N, 1)

    # Adjacency: loaded & upcast from int8 exactly once, reused by every
    # layer / head / edge-type below.
    adj = [adj_ref[i].astype(f32) for i in range(n_edge_types)]

    # Constants hoisted out of all loops.
    row_ids = jax.lax.broadcasted_iota(jnp.int32, (n, n), 0)
    col_ids = jax.lax.broadcasted_iota(jnp.int32, (n, n), 1)
    eye_mask = row_ids == col_ids
    ones_row = jnp.ones((1, n), f32)
    inv_heads = 1.0 / num_heads

    # --- 2. num_layers x ScoreAggregation (heads unrolled in-body) ----------
    for layer in range(num_layers):
        # Row view of the current scores without an in-kernel transpose:
        #   diag[i, i] = score_i ;  s_row[0, t] = sum_k diag[k, t] = score_t
        diag = jnp.where(eye_mask, s_col, 0.0)                         # (N, N)
        s_row = jnp.dot(ones_row, diag, preferred_element_type=f32)    # (1, N)

        acc = jnp.zeros((n, 1), f32)
        for head in range(num_heads):
            k = layer * num_heads + head
            w_s = wsrc_ref[k]                                          # SMEM scalar
            w_d = wdst_ref[k]                                          # SMEM scalar

            # Hoisted out of the edge-type loop (built once per head).
            base0 = w_s * s_col + w_d * s_row                          # (N, N)

            raw = adj[0] * (base0 + c_ref[k * n_edge_types])
            for e in range(1, n_edge_types):
                raw = raw + adj[e] * (base0 + c_ref[k * n_edge_types + e])

            att = jnp.where(raw > 0, raw, 0.2 * raw)                   # LeakyReLU(0.2)
            m = jnp.max(att, axis=-1, keepdims=True)                   # row softmax
            ex = jnp.exp(att - m)
            num = jnp.dot(ex, s_col, preferred_element_type=f32)       # (N, 1)
            den = jnp.sum(ex, axis=-1, keepdims=True)                  # (N, 1)
            # Normalize the (N,1) result instead of the (N,N) probabilities.
            acc = acc + num * pl.reciprocal(den, approx=True)

        s_col = acc * inv_heads                                        # head average

    # --- 3. CentralityAdjustment returns its input / GENI returns the
    #        aggregated score -> no-op on the returned value. ----------------
    out_ref[...] = s_col


def geni_forward(x, params, adj):
    """adj: (n_edge_types, N, N) 0/1 mask (any numeric dtype)."""
    n = x.shape[0]
    attw = jnp.stack(params["att_w"])                   # (L, H, edge_emb_dim + 2, 1)
    num_layers, num_heads = attw.shape[0], attw.shape[1]
    n_edge_types = adj.shape[0]

    # Per-(layer, head) scalars, flattened for cheap 1-D SMEM residency.
    w_src = attw[:, :, 0, 0].reshape(-1)                # (L*H,)  weight on source score
    w_dst = attw[:, :, -1, 0].reshape(-1)               # (L*H,)  weight on target score
    # c[l, h, e] = <edge_emb[e], attw[l, h, 1:-1]>
    c = jnp.einsum("lhd,ed->lhe", attw[:, :, 1:-1, 0], params["edge_emb"]).reshape(-1)

    adj_i8 = adj.astype(jnp.int8)                       # 0/1 mask -> 4x less HBM traffic

    vmem = pl.BlockSpec(memory_space=pltpu.MemorySpace.VMEM)
    smem = pl.BlockSpec(memory_space=pltpu.MemorySpace.SMEM)
    kernel = functools.partial(geni_kernel, num_layers=num_layers,
                               num_heads=num_heads, n_edge_types=n_edge_types)
    return pl.pallas_call(
        kernel,
        out_shape=jax.ShapeDtypeStruct((n, 1), jnp.float32),
        in_specs=[vmem, vmem, vmem, vmem, vmem, vmem, smem, smem, smem],
        out_specs=vmem,
    )(x, params["w1"], params["b1"], params["w2"], params["b2"],
      adj_i8, w_src, w_dst, c)


# ---------------------------------------------------------------------------
# Pure-JAX reference for correctness checking
# ---------------------------------------------------------------------------
def geni_reference(x, params, adj):
    h = x @ params["w1"] + params["b1"]
    h = jnp.where(h > 0, h, 0.2 * h)
    scores = h @ params["w2"] + params["b2"]
    n_edge_types = adj.shape[0]
    n = scores.shape[0]
    for attw in params["att_w"]:
        num_heads = attw.shape[0]
        acc = jnp.zeros_like(scores)
        for hd in range(num_heads):
            w = attw[hd]
            w_s, w_d = w[0, 0], w[-1, 0]
            c = params["edge_emb"] @ w[1:-1, 0]          # (n_edge_types,)
            raw = jnp.zeros((n, n), jnp.float32)
            for i in range(n_edge_types):
                base = w_s * scores + c[i] + w_d * scores.T
                raw = raw + adj[i] * base
            att = jnp.where(raw > 0, raw, 0.2 * raw)
            att = jax.nn.softmax(att, axis=-1)
            acc = acc + att @ scores
        scores = acc / num_heads
    return scores


# ---------------------------------------------------------------------------
# Deterministic parameter init (xavier-style, synthetic)
# ---------------------------------------------------------------------------
def xavier_uniform(key, shape, fan_in, fan_out):
    limit = (6.0 / (fan_in + fan_out)) ** 0.5
    return jax.random.uniform(key, shape, jnp.float32, -limit, limit)


def xavier_normal(key, shape, fan_in, fan_out):
    std = (2.0 / (fan_in + fan_out)) ** 0.5
    return std * jax.random.normal(key, shape, jnp.float32)


if __name__ == "__main__":
    N = 16                    # number of graph nodes
    att_dim = 32              # input feature dim
    hidden = int(att_dim * 0.75)
    edge_emb_dim = 20
    n_edge_types = 2
    num_head_attentions = 2
    num_agg_layer = 2

    key = jax.random.PRNGKey(0)
    keys = jax.random.split(key, 8 + num_agg_layer)

    x = jax.random.normal(keys[0], (N, att_dim), jnp.float32)

    params = {
        "w1": xavier_uniform(keys[1], (att_dim, hidden), att_dim, hidden),
        "b1": 0.01 * jax.random.normal(keys[2], (1, hidden), jnp.float32),
        "w2": xavier_uniform(keys[3], (hidden, 1), hidden, 1),
        "b2": 0.01 * jax.random.normal(keys[4], (1, 1), jnp.float32),
        "edge_emb": xavier_uniform(keys[5], (n_edge_types, edge_emb_dim),
                                   n_edge_types, edge_emb_dim),
        "att_w": [
            xavier_normal(keys[8 + l], (num_head_attentions, edge_emb_dim + 2, 1),
                          edge_emb_dim + 2, 1)
            for l in range(num_agg_layer)
        ],
    }

    # Dense 0/1 adjacency per edge type (equivalent to the sparse edge lists in
    # the PyTorch module; no duplicate edges by construction).
    adj = (jax.random.uniform(keys[6], (n_edge_types, N, N)) < 0.3).astype(jnp.float32)

    out = geni_forward(x, params, adj)
    out = jax.block_until_ready(out)

    ref = geni_reference(x, params, adj)
    assert out.shape == (N, 1)
    assert jnp.allclose(out, ref, rtol=1e-3, atol=1e-3), (
        f"mismatch: max abs diff {jnp.max(jnp.abs(out - ref))}")

    print("KERNEL_OK")
</pallas_src>

<mosaic_0001>
module attributes {stable_mosaic.version = 11 : i64} {
  func.func @geni_kernel(%arg0: memref<16x32xf32, #tpu.memory_space<vmem>>, %arg1: memref<32x24xf32, #tpu.memory_space<vmem>>, %arg2: memref<1x24xf32, #tpu.memory_space<vmem>>, %arg3: memref<24x1xf32, #tpu.memory_space<vmem>>, %arg4: memref<1x1xf32, #tpu.memory_space<vmem>>, %arg5: memref<2x16x16xi8, #tpu.memory_space<vmem>>, %arg6: memref<4xf32, #tpu.memory_space<smem>>, %arg7: memref<4xf32, #tpu.memory_space<smem>>, %arg8: memref<8xf32, #tpu.memory_space<smem>>, %arg9: memref<16x1xf32, #tpu.memory_space<vmem>>) attributes {dimension_semantics = [], scalar_prefetch = 0 : i64, scratch_operands = 0 : i64, tpu.core_type = #tpu.core_type<tc>} {
    %c0 = arith.constant 0 : index
    %c0_0 = arith.constant 0 : index
    %0 = vector.load %arg0[%c0, %c0_0] : memref<16x32xf32, #tpu.memory_space<vmem>>, vector<16x32xf32>
    %c0_1 = arith.constant 0 : index
    %c0_2 = arith.constant 0 : index
    %1 = vector.load %arg1[%c0_1, %c0_2] : memref<32x24xf32, #tpu.memory_space<vmem>>, vector<32x24xf32>
    %cst = arith.constant dense<0.000000e+00> : vector<16x24xf32>
    %2 = tpu.matmul %0, %1, %cst {dimension_numbers = #tpu.dot_dimension_numbers<[1], [0], [0], [1], [0, 0, 1, 1], [], []>} : vector<16x32xf32>, vector<32x24xf32>, vector<16x24xf32> -> vector<16x24xf32>
    %c0_3 = arith.constant 0 : index
    %c0_4 = arith.constant 0 : index
    %3 = vector.load %arg2[%c0_3, %c0_4] : memref<1x24xf32, #tpu.memory_space<vmem>>, vector<1x24xf32>
    %4 = vector.broadcast %3 : vector<1x24xf32> to vector<16x24xf32>
    %5 = arith.addf %2, %4 : vector<16x24xf32>
    %cst_5 = arith.constant 0.000000e+00 : f32
    %6 = vector.broadcast %cst_5 : f32 to vector<16x24xf32>
    %7 = arith.cmpf ogt, %5, %6 : vector<16x24xf32>
    %cst_6 = arith.constant 2.000000e-01 : f32
    %8 = vector.broadcast %cst_6 : f32 to vector<16x24xf32>
    %9 = arith.mulf %8, %5 : vector<16x24xf32>
    %10 = arith.select %7, %5, %9 : vector<16x24xi1>, vector<16x24xf32>
    %c0_7 = arith.constant 0 : index
    %c0_8 = arith.constant 0 : index
    %11 = vector.load %arg3[%c0_7, %c0_8] : memref<24x1xf32, #tpu.memory_space<vmem>>, vector<24x1xf32>
    %cst_9 = arith.constant dense<0.000000e+00> : vector<16x1xf32>
    %12 = tpu.matmul %10, %11, %cst_9 {dimension_numbers = #tpu.dot_dimension_numbers<[1], [0], [0], [1], [0, 0, 1, 1], [], []>} : vector<16x24xf32>, vector<24x1xf32>, vector<16x1xf32> -> vector<16x1xf32>
    %c0_10 = arith.constant 0 : index
    %c0_11 = arith.constant 0 : index
    %13 = vector.load %arg4[%c0_10, %c0_11] : memref<1x1xf32, #tpu.memory_space<vmem>>, vector<1x1xf32>
    %14 = vector.broadcast %13 : vector<1x1xf32> to vector<16x1xf32>
    %15 = arith.addf %12, %14 : vector<16x1xf32>
    %c0_12 = arith.constant 0 : index
    %c0_13 = arith.constant 0 : index
    %c0_14 = arith.constant 0 : index
    %16 = vector.load %arg5[%c0_12, %c0_13, %c0_14] : memref<2x16x16xi8, #tpu.memory_space<vmem>>, vector<1x16x16xi8>
    %17 = vector.shape_cast %16 : vector<1x16x16xi8> to vector<16x16xi8>
    %18 = arith.sitofp %17 : vector<16x16xi8> to vector<16x16xf32>
    %c1 = arith.constant 1 : index
    %c0_15 = arith.constant 0 : index
    %c0_16 = arith.constant 0 : index
    %19 = vector.load %arg5[%c1, %c0_15, %c0_16] : memref<2x16x16xi8, #tpu.memory_space<vmem>>, vector<1x16x16xi8>
    %20 = vector.shape_cast %19 : vector<1x16x16xi8> to vector<16x16xi8>
    %21 = arith.sitofp %20 : vector<16x16xi8> to vector<16x16xf32>
    %22 = tpu.iota {dimensions = array<i32: 0>} : vector<16x16xi32>
    %23 = tpu.iota {dimensions = array<i32: 1>} : vector<16x16xi32>
    %24 = arith.cmpi eq, %22, %23 : vector<16x16xi32>
    %cst_17 = arith.constant 1.000000e+00 : f32
    %25 = vector.broadcast %cst_17 : f32 to vector<1x16xf32>
    %cst_18 = arith.constant 0.000000e+00 : f32
    %26 = vector.shape_cast %15 : vector<16x1xf32> to vector<16x1xf32>
    %27 = vector.broadcast %26 : vector<16x1xf32> to vector<16x16xf32>
    %28 = vector.broadcast %cst_18 : f32 to vector<16x16xf32>
    %29 = arith.select %24, %27, %28 : vector<16x16xi1>, vector<16x16xf32>
    %cst_19 = arith.constant dense<0.000000e+00> : vector<1x16xf32>
    %30 = tpu.matmul %25, %29, %cst_19 {dimension_numbers = #tpu.dot_dimension_numbers<[1], [0], [0], [1], [0, 0, 1, 1], [], []>} : vector<1x16xf32>, vector<16x16xf32>, vector<1x16xf32> -> vector<1x16xf32>
    %cst_20 = arith.constant 0.000000e+00 : f32
    %31 = vector.broadcast %cst_20 : f32 to vector<16x1xf32>
    %c0_21 = arith.constant 0 : index
    %32 = memref.load %arg6[%c0_21] : memref<4xf32, #tpu.memory_space<smem>>
    %c0_22 = arith.constant 0 : index
    %33 = memref.load %arg7[%c0_22] : memref<4xf32, #tpu.memory_space<smem>>
    %34 = vector.broadcast %32 : f32 to vector<16x1xf32>
    %35 = arith.mulf %34, %15 : vector<16x1xf32>
    %36 = vector.broadcast %33 : f32 to vector<1x16xf32>
    %37 = arith.mulf %36, %30 : vector<1x16xf32>
    %38 = vector.broadcast %35 : vector<16x1xf32> to vector<16x16xf32>
    %39 = vector.broadcast %37 : vector<1x16xf32> to vector<16x16xf32>
    %40 = arith.addf %38, %39 : vector<16x16xf32>
    %c0_23 = arith.constant 0 : index
    %41 = memref.load %arg8[%c0_23] : memref<8xf32, #tpu.memory_space<smem>>
    %42 = vector.broadcast %41 : f32 to vector<16x16xf32>
    %43 = arith.addf %40, %42 : vector<16x16xf32>
    %44 = arith.mulf %18, %43 : vector<16x16xf32>
    %c1_24 = arith.constant 1 : index
    %45 = memref.load %arg8[%c1_24] : memref<8xf32, #tpu.memory_space<smem>>
    %46 = vector.broadcast %45 : f32 to vector<16x16xf32>
    %47 = arith.addf %40, %46 : vector<16x16xf32>
    %48 = arith.mulf %21, %47 : vector<16x16xf32>
    %49 = arith.addf %44, %48 : vector<16x16xf32>
    %cst_25 = arith.constant 0.000000e+00 : f32
    %50 = vector.broadcast %cst_25 : f32 to vector<16x16xf32>
    %51 = arith.cmpf ogt, %49, %50 : vector<16x16xf32>
    %cst_26 = arith.constant 2.000000e-01 : f32
    %52 = vector.broadcast %cst_26 : f32 to vector<16x16xf32>
    %53 = arith.mulf %52, %49 : vector<16x16xf32>
    %54 = arith.select %51, %49, %53 : vector<16x16xi1>, vector<16x16xf32>
    %cst_27 = arith.constant dense<0xFF800000> : vector<16xf32>
    %55 = vector.multi_reduction <maximumf>, %54, %cst_27 [1] : vector<16x16xf32> to vector<16xf32>
    %56 = vector.shape_cast %55 : vector<16xf32> to vector<16x1xf32>
    %57 = vector.broadcast %56 : vector<16x1xf32> to vector<16x16xf32>
    %58 = arith.subf %54, %57 : vector<16x16xf32>
    %59 = math.exp %58 : vector<16x16xf32>
    %cst_28 = arith.constant dense<0.000000e+00> : vector<16x1xf32>
    %60 = tpu.matmul %59, %15, %cst_28 {dimension_numbers = #tpu.dot_dimension_numbers<[1], [0], [0], [1], [0, 0, 1, 1], [], []>} : vector<16x16xf32>, vector<16x1xf32>, vector<16x1xf32> -> vector<16x1xf32>
    %cst_29 = arith.constant dense<0.000000e+00> : vector<16xf32>
    %61 = vector.multi_reduction <add>, %59, %cst_29 [1] : vector<16x16xf32> to vector<16xf32>
    %62 = vector.shape_cast %61 : vector<16xf32> to vector<16x1xf32>
    %63 = tpu.reciprocal %62 {approx = true} : vector<16x1xf32> -> vector<16x1xf32>
    %64 = arith.mulf %60, %63 : vector<16x1xf32>
    %65 = arith.addf %31, %64 : vector<16x1xf32>
    %c1_30 = arith.constant 1 : index
    %66 = memref.load %arg6[%c1_30] : memref<4xf32, #tpu.memory_space<smem>>
    %c1_31 = arith.constant 1 : index
    %67 = memref.load %arg7[%c1_31] : memref<4xf32, #tpu.memory_space<smem>>
    %68 = vector.broadcast %66 : f32 to vector<16x1xf32>
    %69 = arith.mulf %68, %15 : vector<16x1xf32>
    %70 = vector.broadcast %67 : f32 to vector<1x16xf32>
    %71 = arith.mulf %70, %30 : vector<1x16xf32>
    %72 = vector.broadcast %69 : vector<16x1xf32> to vector<16x16xf32>
    %73 = vector.broadcast %71 : vector<1x16xf32> to vector<16x16xf32>
    %74 = arith.addf %72, %73 : vector<16x16xf32>
    %c2 = arith.constant 2 : index
    %75 = memref.load %arg8[%c2] : memref<8xf32, #tpu.memory_space<smem>>
    %76 = vector.broadcast %75 : f32 to vector<16x16xf32>
    %77 = arith.addf %74, %76 : vector<16x16xf32>
    %78 = arith.mulf %18, %77 : vector<16x16xf32>
    %c3 = arith.constant 3 : index
    %79 = memref.load %arg8[%c3] : memref<8xf32, #tpu.memory_space<smem>>
    %80 = vector.broadcast %79 : f32 to vector<16x16xf32>
    %81 = arith.addf %74, %80 : vector<16x16xf32>
    %82 = arith.mulf %21, %81 : vector<16x16xf32>
    %83 = arith.addf %78, %82 : vector<16x16xf32>
    %cst_32 = arith.constant 0.000000e+00 : f32
    %84 = vector.broadcast %cst_32 : f32 to vector<16x16xf32>
    %85 = arith.cmpf ogt, %83, %84 : vector<16x16xf32>
    %cst_33 = arith.constant 2.000000e-01 : f32
    %86 = vector.broadcast %cst_33 : f32 to vector<16x16xf32>
    %87 = arith.mulf %86, %83 : vector<16x16xf32>
    %88 = arith.select %85, %83, %87 : vector<16x16xi1>, vector<16x16xf32>
    %cst_34 = arith.constant dense<0xFF800000> : vector<16xf32>
    %89 = vector.multi_reduction <maximumf>, %88, %cst_34 [1] : vector<16x16xf32> to vector<16xf32>
    %90 = vector.shape_cast %89 : vector<16xf32> to vector<16x1xf32>
    %91 = vector.broadcast %90 : vector<16x1xf32> to vector<16x16xf32>
    %92 = arith.subf %88, %91 : vector<16x16xf32>
    %93 = math.exp %92 : vector<16x16xf32>
    %cst_35 = arith.constant dense<0.000000e+00> : vector<16x1xf32>
    %94 = tpu.matmul %93, %15, %cst_35 {dimension_numbers = #tpu.dot_dimension_numbers<[1], [0], [0], [1], [0, 0, 1, 1], [], []>} : vector<16x16xf32>, vector<16x1xf32>, vector<16x1xf32> -> vector<16x1xf32>
    %cst_36 = arith.constant dense<0.000000e+00> : vector<16xf32>
    %95 = vector.multi_reduction <add>, %93, %cst_36 [1] : vector<16x16xf32> to vector<16xf32>
    %96 = vector.shape_cast %95 : vector<16xf32> to vector<16x1xf32>
    %97 = tpu.reciprocal %96 {approx = true} : vector<16x1xf32> -> vector<16x1xf32>
    %98 = arith.mulf %94, %97 : vector<16x1xf32>
    %99 = arith.addf %65, %98 : vector<16x1xf32>
    %cst_37 = arith.constant 5.000000e-01 : f32
    %100 = vector.broadcast %cst_37 : f32 to vector<16x1xf32>
    %101 = arith.mulf %99, %100 : vector<16x1xf32>
    %cst_38 = arith.constant 0.000000e+00 : f32
    %102 = vector.shape_cast %101 : vector<16x1xf32> to vector<16x1xf32>
    %103 = vector.broadcast %102 : vector<16x1xf32> to vector<16x16xf32>
    %104 = vector.broadcast %cst_38 : f32 to vector<16x16xf32>
    %105 = arith.select %24, %103, %104 : vector<16x16xi1>, vector<16x16xf32>
    %cst_39 = arith.constant dense<0.000000e+00> : vector<1x16xf32>
    %106 = tpu.matmul %25, %105, %cst_39 {dimension_numbers = #tpu.dot_dimension_numbers<[1], [0], [0], [1], [0, 0, 1, 1], [], []>} : vector<1x16xf32>, vector<16x16xf32>, vector<1x16xf32> -> vector<1x16xf32>
    %cst_40 = arith.constant 0.000000e+00 : f32
    %107 = vector.broadcast %cst_40 : f32 to vector<16x1xf32>
    %c2_41 = arith.constant 2 : index
    %108 = memref.load %arg6[%c2_41] : memref<4xf32, #tpu.memory_space<smem>>
    %c2_42 = arith.constant 2 : index
    %109 = memref.load %arg7[%c2_42] : memref<4xf32, #tpu.memory_space<smem>>
    %110 = vector.broadcast %108 : f32 to vector<16x1xf32>
    %111 = arith.mulf %110, %101 : vector<16x1xf32>
    %112 = vector.broadcast %109 : f32 to vector<1x16xf32>
    %113 = arith.mulf %112, %106 : vector<1x16xf32>
    %114 = vector.broadcast %111 : vector<16x1xf32> to vector<16x16xf32>
    %115 = vector.broadcast %113 : vector<1x16xf32> to vector<16x16xf32>
    %116 = arith.addf %114, %115 : vector<16x16xf32>
    %c4 = arith.constant 4 : index
    %117 = memref.load %arg8[%c4] : memref<8xf32, #tpu.memory_space<smem>>
    %118 = vector.broadcast %117 : f32 to vector<16x16xf32>
    %119 = arith.addf %116, %118 : vector<16x16xf32>
    %120 = arith.mulf %18, %119 : vector<16x16xf32>
    %c5 = arith.constant 5 : index
    %121 = memref.load %arg8[%c5] : memref<8xf32, #tpu.memory_space<smem>>
    %122 = vector.broadcast %121 : f32 to vector<16x16xf32>
    %123 = arith.addf %116, %122 : vector<16x16xf32>
    %124 = arith.mulf %21, %123 : vector<16x16xf32>
    %125 = arith.addf %120, %124 : vector<16x16xf32>
    %cst_43 = arith.constant 0.000000e+00 : f32
    %126 = vector.broadcast %cst_43 : f32 to vector<16x16xf32>
    %127 = arith.cmpf ogt, %125, %126 : vector<16x16xf32>
    %cst_44 = arith.constant 2.000000e-01 : f32
    %128 = vector.broadcast %cst_44 : f32 to vector<16x16xf32>
    %129 = arith.mulf %128, %125 : vector<16x16xf32>
    %130 = arith.select %127, %125, %129 : vector<16x16xi1>, vector<16x16xf32>
    %cst_45 = arith.constant dense<0xFF800000> : vector<16xf32>
    %131 = vector.multi_reduction <maximumf>, %130, %cst_45 [1] : vector<16x16xf32> to vector<16xf32>
    %132 = vector.shape_cast %131 : vector<16xf32> to vector<16x1xf32>
    %133 = vector.broadcast %132 : vector<16x1xf32> to vector<16x16xf32>
    %134 = arith.subf %130, %133 : vector<16x16xf32>
    %135 = math.exp %134 : vector<16x16xf32>
    %cst_46 = arith.constant dense<0.000000e+00> : vector<16x1xf32>
    %136 = tpu.matmul %135, %101, %cst_46 {dimension_numbers = #tpu.dot_dimension_numbers<[1], [0], [0], [1], [0, 0, 1, 1], [], []>} : vector<16x16xf32>, vector<16x1xf32>, vector<16x1xf32> -> vector<16x1xf32>
    %cst_47 = arith.constant dense<0.000000e+00> : vector<16xf32>
    %137 = vector.multi_reduction <add>, %135, %cst_47 [1] : vector<16x16xf32> to vector<16xf32>
    %138 = vector.shape_cast %137 : vector<16xf32> to vector<16x1xf32>
    %139 = tpu.reciprocal %138 {approx = true} : vector<16x1xf32> -> vector<16x1xf32>
    %140 = arith.mulf %136, %139 : vector<16x1xf32>
    %141 = arith.addf %107, %140 : vector<16x1xf32>
    %c3_48 = arith.constant 3 : index
    %142 = memref.load %arg6[%c3_48] : memref<4xf32, #tpu.memory_space<smem>>
    %c3_49 = arith.constant 3 : index
    %143 = memref.load %arg7[%c3_49] : memref<4xf32, #tpu.memory_space<smem>>
    %144 = vector.broadcast %142 : f32 to vector<16x1xf32>
    %145 = arith.mulf %144, %101 : vector<16x1xf32>
    %146 = vector.broadcast %143 : f32 to vector<1x16xf32>
    %147 = arith.mulf %146, %106 : vector<1x16xf32>
    %148 = vector.broadcast %145 : vector<16x1xf32> to vector<16x16xf32>
    %149 = vector.broadcast %147 : vector<1x16xf32> to vector<16x16xf32>
    %150 = arith.addf %148, %149 : vector<16x16xf32>
    %c6 = arith.constant 6 : index
    %151 = memref.load %arg8[%c6] : memref<8xf32, #tpu.memory_space<smem>>
    %152 = vector.broadcast %151 : f32 to vector<16x16xf32>
    %153 = arith.addf %150, %152 : vector<16x16xf32>
    %154 = arith.mulf %18, %153 : vector<16x16xf32>
    %c7 = arith.constant 7 : index
    %155 = memref.load %arg8[%c7] : memref<8xf32, #tpu.memory_space<smem>>
    %156 = vector.broadcast %155 : f32 to vector<16x16xf32>
    %157 = arith.addf %150, %156 : vector<16x16xf32>
    %158 = arith.mulf %21, %157 : vector<16x16xf32>
    %159 = arith.addf %154, %158 : vector<16x16xf32>
    %cst_50 = arith.constant 0.000000e+00 : f32
    %160 = vector.broadcast %cst_50 : f32 to vector<16x16xf32>
    %161 = arith.cmpf ogt, %159, %160 : vector<16x16xf32>
    %cst_51 = arith.constant 2.000000e-01 : f32
    %162 = vector.broadcast %cst_51 : f32 to vector<16x16xf32>
    %163 = arith.mulf %162, %159 : vector<16x16xf32>
    %164 = arith.select %161, %159, %163 : vector<16x16xi1>, vector<16x16xf32>
    %cst_52 = arith.constant dense<0xFF800000> : vector<16xf32>
    %165 = vector.multi_reduction <maximumf>, %164, %cst_52 [1] : vector<16x16xf32> to vector<16xf32>
    %166 = vector.shape_cast %165 : vector<16xf32> to vector<16x1xf32>
    %167 = vector.broadcast %166 : vector<16x1xf32> to vector<16x16xf32>
    %168 = arith.subf %164, %167 : vector<16x16xf32>
    %169 = math.exp %168 : vector<16x16xf32>
    %cst_53 = arith.constant dense<0.000000e+00> : vector<16x1xf32>
    %170 = tpu.matmul %169, %101, %cst_53 {dimension_numbers = #tpu.dot_dimension_numbers<[1], [0], [0], [1], [0, 0, 1, 1], [], []>} : vector<16x16xf32>, vector<16x1xf32>, vector<16x1xf32> -> vector<16x1xf32>
    %cst_54 = arith.constant dense<0.000000e+00> : vector<16xf32>
    %171 = vector.multi_reduction <add>, %169, %cst_54 [1] : vector<16x16xf32> to vector<16xf32>
    %172 = vector.shape_cast %171 : vector<16xf32> to vector<16x1xf32>
    %173 = tpu.reciprocal %172 {approx = true} : vector<16x1xf32> -> vector<16x1xf32>
    %174 = arith.mulf %170, %173 : vector<16x1xf32>
    %175 = arith.addf %141, %174 : vector<16x1xf32>
    %cst_55 = arith.constant 5.000000e-01 : f32
    %176 = vector.broadcast %cst_55 : f32 to vector<16x1xf32>
    %177 = arith.mulf %175, %176 : vector<16x1xf32>
    %c0_56 = arith.constant 0 : index
    %c0_57 = arith.constant 0 : index
    %178 = vector.load %arg9[%c0_56, %c0_57] : memref<16x1xf32, #tpu.memory_space<vmem>>, vector<16x1xf32>
    tpu.vector_store %arg9[%c0_56, %c0_57], %177 {strides = array<i32>} : memref<16x1xf32, #tpu.memory_space<vmem>>, vector<16x1xf32>,
    return
  }
}

</mosaic_0001>

<bundles_post_ra>
// kernel: tpu_custom_call.1
= control target key start
LH: loop header
LB: loop body
LE: loop exit
PB: predicated region body
PF: predicated region fallthrough
CT: control target
= control target key end

     0   :  { %s947_s0 = inlined_call_operand.vmem [shape: f32[16,32], index: 0, kind: input, shape index: {}]   ;;  %s948_s1 = inlined_call_operand.vmem [shape: f32[32,24], index: 1, kind: input, shape index: {}]   ;;  %s949_s2 = inlined_call_operand.vmem [shape: f32[1,24], index: 2, kind: input, shape index: {}]   ;;  %s950_s3 = inlined_call_operand.vmem [shape: f32[24,1], index: 3, kind: input, shape index: {}]   ;;  %s951_s4 = inlined_call_operand.<no memory space> [shape: f32[1,1], index: 4, kind: input, shape index: {}]   ;;  %s952_s5 = inlined_call_operand.vmem [shape: s8[2,16,16], index: 5, kind: input, shape index: {}]   ;;  %s953_s6 = inlined_call_operand.vmem [shape: f32[4], index: 6, kind: input, shape index: {}]   ;;  %s954_s7 = inlined_call_operand.vmem [shape: f32[4], index: 7, kind: input, shape index: {}]   ;;  %s955_s8 = inlined_call_operand.vmem [shape: f32[8], index: 8, kind: input, shape index: {}]   ;;  %s956_s9 = inlined_call_operand.vmem [shape: f32[16,1], index: 9, kind: output, shape index: {}]  }
   0x1   :  { %v14_v0 = vstv %s951_s4 }
   0x2   :  { %15 = vst [vmem:[#allocation2] sm:$0x1] %v14_v0 }
   0x3   :  { %16 = vsyncpa [#allocation4], 0 }
   0x4   :  { %17 = vsyncpa [#allocation6], 0  ;;  %s44_s13 = sshll.u32 %s954_s7, 4  ;;  %s35_s16 = sshll.u32 %s953_s6, 4  ;;  %s45_s13 = int_to_ptr.vmem [resolvable:$true] %s44_s13  ;;  %s36_s16 = int_to_ptr.vmem [resolvable:$true] %s35_s16 }
   0x5   :  { %s754_s17 = smov [#allocation5]   ;;  %s755_s18 = smov [#allocation3]  }
   0x6   :  { %47 = dma.vmem_to_smem %s45_s13, 16, %s754_s17, [#allocation6]  }
   0x7   :  { %38 = dma.vmem_to_smem %s36_s16, 16, %s755_s18, [#allocation4]  }
   0x8   :  { %s53_s4 = sshll.u32 %s955_s8, 4  ;;  %s756_s21 = smov [#allocation7]   ;;  %s54_s4 = int_to_ptr.vmem [resolvable:$true] %s53_s4 }
   0x9   :  { %56 = dma.vmem_to_smem %s54_s4, 16, %s756_s21, [#allocation6]  }
   0xa   :  { %750 = dma.done.wait [#allocation4], 16  }
   0xb   :  { %751 = vsyncadd [#allocation4], 4294967280 }
   0xc   :  { %752 = dma.done.wait [#allocation6], 32  }
   0xd   :  { %753 = vsyncadd [#allocation6], 4294967264 }
   0xe   :  { %69 = sfence }
   0xf   :  { %v75_v1 = vld [vmem:[%s948_s1 + $0x18] sm:$0xff]  ;;  %v74_v2 = vld [vmem:[%s948_s1 + $0x10] sm:$0xff]  ;;  %v73_v3 = vld [vmem:[%s948_s1 + $0x8] sm:$0xff]  ;;  %vm80_vm0 = vcmask 261120   ;;  %vm123_vm2 = vcmask 195584   ;;  %v757_v19 = vmov 0   ;;  %v166_v31 = vlaneseq }
  0x10   :  { %99 = vmatpush.msra.mxu0 %v75_v1  ;;  %v72_v4 = vld [vmem:[%s948_s1] sm:$0xff]  ;;  %v71_v6 = vld [vmem:[%s947_s0 + $0x8] sm:$0xff]  ;;  %v118_v7 = vld [vmem:[%s950_s3 + $0x10] sm:$0xff]  ;;  %678 = vset.pattern.permute.xlu1 %v757_v19  ;;  %vm185_vm6 = vcmask 130048   ;;  %v758_v37 = vmov 1.0   ;;  %s639_s17 = sld [smem:[#allocation5 + $0x1]] }
  0x11   :  { %v70_v5 = vld [vmem:[%s947_s0] sm:$0xff]  ;;  %143 = vmatpush.msra.mxu1 %v118_v7  ;;  %v117_v8 = vld [vmem:[%s950_s3 + $0x8] sm:$0xff]  ;;  %677 = vset.pattern.permute.xlu0 %v757_v19  ;;  %s209_s0 = sld [smem:[#allocation3]]  ;;  %v851_v32 = vshrl.u32 %v166_v31, 7  ;;  %v856_v34 = vand.u32 127, %v166_v31  ;;  %vm617_vm15 = vcmask 7168  }
  0x12   :  { %100 = vmatpush.msra.mxu0 %v74_v2  ;;  %v116_v9 = vld [vmem:[%s950_s3] sm:$0xff]  ;;  %679 = vset.pattern.permute.xlu2 %v757_v19  ;;  %s210_s3 = sld [smem:[#allocation5]] }
  0x13   :  { %144 = vmatpush.msra.mxu1 %v117_v8  ;;  %v680_v10 = vld [vmem:[%s949_s2] ss:$0 sm:$0xff]  ;;  %s638_s2 = sld [smem:[#allocation3 + $0x1]]  ;;  %v854_v33 = vadd.s32 8, %v851_v32  ;;  %vm171_vm5 = vcmp.eq.s32.totalorder %v851_v32, %v856_v34 }
  0x14   :  { %101 = vmatpush.msra.mxu0 %v73_v3  ;;  %v681_v20 = vld [vmem:[#allocation2] ss:$0 sm:$0xff]  ;;  %s870_s18 = sld [smem:[#allocation7]] }
  0x15   :  { %145 = vmatpush.msra.mxu1 %v116_v9  ;;  %vm172_vm4 = vcmp.eq.s32.totalorder %v854_v33, %v856_v34  ;;  %s872_s19 = sld [smem:[#allocation7 + $0x1]]  ;;  %v660_v40 = vld [vmem:[%s952_s5] sm:$0xff]  }
  0x16   :  { %102 = vmatpush.msra.mxu0 %v72_v4  ;;  %s874_s20 = sld [smem:[#allocation7 + $0x2]]  ;;  %v307_v42 = vstv %s639_s17  ;;  %v662_v44 = vunpack.c.1.s8 %v660_v40  ;;  %v666_v45 = vunpack.c.3.s8 %v660_v40  ;;  %v661_v46 = vunpack.c.0.s8 %v660_v40 }
  0x17   :  { %626 = vmatmul.msk.f32.vlgmr.msra.gmra.mxu0 %vm80_vm0, %v70_v5  ;;  %v211_v22 = vstv %s209_s0  ;;  %s876_s4 = sld [smem:[#allocation7 + $0x3]]  ;;  %v665_v47 = vunpack.c.2.s8 %v660_v40 }
  0x18   :  { %v214_v41 = vstv %s210_s3  ;;  %v885_v58 = vcvt.s32.f32 %v662_v44  ;;  %v887_v59 = vcvt.s32.f32 %v666_v45  ;;  %v889_v60 = vcvt.s32.f32 %v661_v46  ;;  %s653_s5 = sld [smem:[#allocation3 + $0x3]] }
  0x19   :  { %v304_v27 = vstv %s638_s2  ;;  %v891_v61 = vcvt.s32.f32 %v665_v47  ;;  %s647_s22 = sld [smem:[#allocation3 + $0x2]] }
  0x1a   :  { %v230_v50 = vstv %s870_s18  ;;  %s648_s6 = sld [smem:[#allocation5 + $0x2]] }
  0x1b   :  { %v236_v51 = vstv %s872_s19  ;;  %s654_s23 = sld [smem:[#allocation5 + $0x3]] }
  0x1c   :  { %v323_v54 = vstv %s874_s20  ;;  %s649_s24 = sld [smem:[#allocation7 + $0x4]] }
  0x1d   :  { %v329_v55 = vstv %s876_s4  ;;  %s650_s25 = sld [smem:[#allocation7 + $0x5]] }
  0x1e   :  { %s655_s8 = sld [smem:[#allocation7 + $0x6]] }
  0x1f   :  { %627 = vmatmul.msk.f32.gmra.mxu0 %vm80_vm0, %v71_v6  ;;  %s656_s26 = sld [smem:[#allocation7 + $0x7]] }
  0x21   :  { %v527_v33 = vstv %s654_s23 }
  0x94   :  { %v104_v11 = vpop.f32.mrf.mxu0 }
  0x95   :  { %v105_v12 = vadd.f32 %v680_v10, %v104_v11 }
  0x97   :  { %v112_v13 = vmul.f32 0.2, %v105_v12  ;;  %vm110_vm1 = vcmp.gt.f32.partialorder %v105_v12, 0.0 }
  0x99   :  { %v114_v14 = vsel %vm110_vm1, %v105_v12, %v112_v13 }
  0x9a   :  { %628 = vmatmul.msk.f32.vlgmr.msra.gmra.mxu1 %vm123_vm2, %v114_v14 }
  0x9c   :  { %v107_v15 = vpop.f32.mrf.mxu0 }
  0x9d   :  { %v108_v16 = vadd.f32 %v680_v10, %v107_v15 }
  0x9f   :  { %v113_v17 = vmul.f32 0.2, %v108_v16  ;;  %vm111_vm3 = vcmp.gt.f32.partialorder %v108_v16, 0.0 }
  0xa1   :  { %v115_v18 = vsel %vm111_vm3, %v108_v16, %v113_v17 }
  0xa2   :  { %629 = vmatmul.msk.f32.gmra.mxu1 %vm123_vm2, %v115_v18 }
 0x117   :  { %v147_v21 = vpop.f32.mrf.mxu1 }
 0x118   :  { %v148_v23 = vadd.f32 %v681_v20, %v147_v21 }
 0x11a   :  { %v212_v24 = vmul.f32 %v211_v22, %v148_v23  ;;  %v305_v29 = vmul.f32 %v304_v27, %v148_v23 }
 0x11c   :  { %218 = vperm.xlu1 %678, %v212_v24  }
 0x11f   :  { %v150_v25 = vpop.f32.mrf.mxu1 }
 0x120   :  { %v151_v26 = vadd.f32 %v681_v20, %v150_v25 }
 0x122   :  { %180 = vperm.xlu0 %677, %v151_v26   ;;  %281 = vmatpush.msra.mxu3 %v151_v26  ;;  %v213_v28 = vmul.f32 %v211_v22, %v151_v26  ;;  %v306_v30 = vmul.f32 %v304_v27, %v151_v26 }
 0x124   :  { %223 = vperm.xlu2 %679, %v213_v28   ;;  %282 = vmatpush.msra.mxu3 %v148_v23 }
 0x125   :  { %311 = vperm.xlu1 %678, %v305_v29  }
 0x12a   :  { %175 = vperm.xlu0 %677, %v148_v23  }
 0x12c   :  { %316 = vperm.xlu2 %679, %v306_v30  }
 0x17e   :  { %v224_v38 = vpop.permute.xlu2 %223 }
 0x186   :  { %v317_v56 = vpop.permute.xlu2 %316 }
 0x18e   :  { %v219_v39 = vpop.permute.xlu1 %218 }
 0x194   :  { %v181_v35 = vpop.permute.xlu0 %180 }
 0x195   :  { %632 = vmatpush.msk.msra.mxu2 %vm172_vm4, %v181_v35 }
 0x197   :  { %v312_v57 = vpop.permute.xlu1 %311 }
 0x19c   :  { %v176_v36 = vpop.permute.xlu0 %175 }
 0x19d   :  { %633 = vmatpush.msk.msra.mxu2 %vm171_vm5, %v176_v36 }
 0x19e   :  { %634 = vmatmul.msk.f32.vlgmr.msra.gmra.mxu2 %vm185_vm6, %v758_v37 }
 0x19f   :  { %374 = vmatpush.msrb.mxu2 %v151_v26 }
 0x1a1   :  { %375 = vmatpush.msrb.mxu2 %v148_v23 }
 0x221   :  { %v206_v43 = vpop.f32.mrf.mxu2 }
 0x222   :  { %v215_v48 = vmul.f32 %v214_v41, %v206_v43  ;;  %v308_v49 = vmul.f32 %v307_v42, %v206_v43 }
 0x224   :  { %v226_v52 = vperm.slane %v215_v48, 0  ;;  %v319_v53 = vperm.slane %v308_v49, 0 }
 0x226   :  { %v227_v62 = vadd.f32 %v226_v52, %v219_v39  ;;  %v228_v63 = vadd.f32 %v226_v52, %v224_v38  ;;  %v320_v0 = vadd.f32 %v319_v53, %v312_v57  ;;  %v321_v1 = vadd.f32 %v319_v53, %v317_v56 }
 0x228   :  { %v231_v2 = vadd.f32 %v230_v50, %v227_v62  ;;  %v232_v3 = vadd.f32 %v230_v50, %v228_v63  ;;  %v237_v4 = vadd.f32 %v236_v51, %v227_v62  ;;  %v238_v5 = vadd.f32 %v236_v51, %v228_v63 }
 0x229   :  { %v324_v6 = vadd.f32 %v323_v54, %v320_v0  ;;  %v325_v7 = vadd.f32 %v323_v54, %v321_v1  ;;  %v330_v8 = vadd.f32 %v329_v55, %v320_v0  ;;  %v331_v9 = vadd.f32 %v329_v55, %v321_v1 }
 0x22a   :  { %v234_v10 = vmul.f32 %v232_v3, %v885_v58  ;;  %v240_v11 = vmul.f32 %v238_v5, %v887_v59  ;;  %v233_v12 = vmul.f32 %v231_v2, %v889_v60  ;;  %v239_v13 = vmul.f32 %v237_v4, %v891_v61 }
 0x22b   :  { %v326_v14 = vmul.f32 %v324_v6, %v889_v60  ;;  %v332_v15 = vmul.f32 %v330_v8, %v891_v61  ;;  %v327_v16 = vmul.f32 %v325_v7, %v885_v58  ;;  %v333_v17 = vmul.f32 %v331_v9, %v887_v59 }
 0x22c   :  { %v242_v18 = vadd.f32 %v240_v11, %v234_v10  ;;  %v241_v19 = vadd.f32 %v239_v13, %v233_v12 }
 0x22d   :  { %v334_v20 = vadd.f32 %v332_v15, %v326_v14  ;;  %v335_v21 = vadd.f32 %v333_v17, %v327_v16  ;;  %v524_v16 = vstv %s653_s5 }
 0x22e   :  { %vm244_vm7 = vcmp.gt.f32.partialorder %v242_v18, 0.0  ;;  %v246_v22 = vmul.f32 0.2, %v242_v18  ;;  %vm243_vm8 = vcmp.gt.f32.partialorder %v241_v19, 0.0  ;;  %v245_v23 = vmul.f32 0.2, %v241_v19 }
 0x22f   :  { %vm336_vm9 = vcmp.gt.f32.partialorder %v334_v20, 0.0  ;;  %v338_v24 = vmul.f32 0.2, %v334_v20  ;;  %v339_v31 = vmul.f32 0.2, %v335_v21  ;;  %vm337_vm10 = vcmp.gt.f32.partialorder %v335_v21, 0.0 }
 0x230   :  { %v248_v25 = vsel %vm244_vm7, %v242_v18, %v246_v22  ;;  %v247_v26 = vsel %vm243_vm8, %v241_v19, %v245_v23 }
 0x231   :  { %v252_v27 = vsel %vm185_vm6, %v248_v25, -inf  ;;  %v249_v28 = vsel %vm185_vm6, %v247_v26, -inf  ;;  %v340_v29 = vsel %vm336_vm9, %v334_v20, %v338_v24  ;;  %v341_v35 = vsel %vm337_vm10, %v335_v21, %v339_v31 }
 0x232   :  { %253 = vmax.xlane.f32.xlu2 %v252_v27  ;;  %250 = vmax.xlane.f32.xlu0 %v249_v28  ;;  %v342_v30 = vsel %vm185_vm6, %v340_v29, -inf  ;;  %v345_v36 = vsel %vm185_vm6, %v341_v35, -inf  ;;  %v431_v20 = vstv %s647_s22  ;;  %v434_v27 = vstv %s648_s6 }
 0x233   :  { %343 = vmax.xlane.f32.xlu1 %v342_v30 }
 0x23a   :  { %346 = vmax.xlane.f32.xlu2 %v345_v36 }
 0x2a5   :  { %v254_v38 = vpop.xlane.xlu2 %253  ;;  %v251_v39 = vpop.xlane.xlu0 %250 }
 0x2a6   :  { %v256_v40 = vsub.f32 %v248_v25, %v254_v38  ;;  %v255_v41 = vsub.f32 %v247_v26, %v251_v39  ;;  %v344_v42 = vpop.xlane.xlu1 %343  ;;  %v456_v38 = vstv %s650_s25  ;;  %v543_v39 = vstv %s655_s8 }
 0x2a7   :  { %v348_v43 = vsub.f32 %v340_v29, %v344_v42 }
 0x2a8   :  { %v259_v44 = vmul.f32 1.442695, %v256_v40  ;;  %v257_v45 = vmul.f32 1.442695, %v255_v41  ;;  %v549_v40 = vstv %s656_s26 }
 0x2a9   :  { %v350_v46 = vmul.f32 1.442695, %v348_v43 }
 0x2aa   :  { %682 = vpow2.f32 %v259_v44 }
 0x2ab   :  { %684 = vpow2.f32 %v257_v45 }
 0x2ac   :  { %686 = vpow2.f32 %v350_v46 }
 0x2ad   :  { %v347_v47 = vpop.xlane.xlu2 %346 }
 0x2ae   :  { %v349_v48 = vsub.f32 %v341_v35, %v347_v47 }
 0x2b0   :  { %v683_v49 = vpop.eup %682  ;;  %v352_v50 = vmul.f32 1.442695, %v349_v48 }
 0x2b1   :  { %v685_v51 = vpop.eup %684  ;;  %v293_v52 = vsel %vm185_vm6, %v683_v49, 0.0 }
 0x2b2   :  { %v687_v53 = vpop.eup %686  ;;  %688 = vpow2.f32 %v352_v50  ;;  %636 = vmatmul.msk.f32.vlgmr.msra.gmra.mxu3 %vm185_vm6, %v685_v51  ;;  %294 = vadd.xlane.f32.xlu0 %v293_v52  ;;  %v290_v54 = vsel %vm185_vm6, %v685_v51, 0.0 }
 0x2b3   :  { %642 = vmatmul.msk.f32.vlgmr.msrb.gmra.mxu2 %vm185_vm6, %v687_v53  ;;  %291 = vadd.xlane.f32.xlu2 %v290_v54  ;;  %v383_v57 = vsel %vm185_vm6, %v687_v53, 0.0 }
 0x2b8   :  { %v689_v55 = vpop.eup %688 }
 0x2b9   :  { %v386_v56 = vsel %vm185_vm6, %v689_v55, 0.0 }
 0x2ba   :  { %637 = vmatmul.msk.f32.gmra.mxu3 %vm185_vm6, %v683_v49  ;;  %387 = vadd.xlane.f32.xlu1 %v386_v56 }
 0x2bb   :  { %643 = vmatmul.msk.f32.gmra.mxu2 %vm185_vm6, %v689_v55  ;;  %384 = vadd.xlane.f32.xlu0 %v383_v57 }
 0x325   :  { %v295_v62 = vpop.xlane.xlu0 %294 }
 0x326   :  { %v292_v63 = vpop.xlane.xlu2 %291 }
 0x327   :  { %690 = vrcp.f32 %v292_v63 }
 0x32d   :  { %v691_v1 = vpop.eup %690  ;;  %v388_v3 = vpop.xlane.xlu1 %387 }
 0x32e   :  { %v385_v0 = vpop.xlane.xlu0 %384 }
 0x32f   :  { %692 = vrcp.f32 %v385_v0 }
 0x330   :  { %694 = vrcp.f32 %v295_v62 }
 0x331   :  { %696 = vrcp.f32 %v388_v3 }
 0x335   :  { %v693_v2 = vpop.eup %692  ;;  %v284_v4 = vpop.f32.mrf.mxu3 }
 0x336   :  { %v298_v5 = vmul.f32 %v691_v1, %v284_v4  ;;  %v377_v6 = vpop.f32.mrf.mxu2  ;;  %v695_v10 = vpop.eup %694 }
 0x337   :  { %v391_v7 = vmul.f32 %v693_v2, %v377_v6  ;;  %v697_v12 = vpop.eup %696 }
 0x339   :  { %v393_v8 = vadd.f32 %v391_v7, %v298_v5 }
 0x33b   :  { %v395_v9 = vmul.f32 0.5, %v393_v8 }
 0x33d   :  { %399 = vperm.xlu2 %679, %v395_v9   ;;  %v287_v11 = vpop.f32.mrf.mxu3  ;;  %v525_v19 = vmul.f32 %v524_v16, %v395_v9  ;;  %v432_v23 = vmul.f32 %v431_v20, %v395_v9 }
 0x33e   :  { %v299_v13 = vmul.f32 %v695_v10, %v287_v11  ;;  %v380_v14 = vpop.f32.mrf.mxu2 }
 0x33f   :  { %v392_v15 = vmul.f32 %v697_v12, %v380_v14 }
 0x341   :  { %v394_v17 = vadd.f32 %v392_v15, %v299_v13 }
 0x343   :  { %v396_v18 = vmul.f32 0.5, %v394_v17 }
 0x345   :  { %531 = vperm.xlu2 %679, %v525_v19   ;;  %404 = vperm.xlu1 %678, %v396_v18   ;;  %v433_v21 = vmul.f32 %v431_v20, %v396_v18  ;;  %v526_v22 = vmul.f32 %v524_v16, %v396_v18 }
 0x346   :  { %501 = vmatpush.msrb.mxu1 %v396_v18  ;;  %594 = vmatpush.msrb.mxu0 %v396_v18 }
 0x347   :  { %669 = vmatpush.msra.mxu2 %v396_v18  ;;  %443 = vperm.xlu0 %677, %v433_v21  }
 0x348   :  { %502 = vmatpush.msrb.mxu1 %v395_v9  ;;  %595 = vmatpush.msrb.mxu0 %v395_v9 }
 0x349   :  { %670 = vmatpush.msra.mxu2 %v395_v9 }
 0x34d   :  { %536 = vperm.xlu1 %678, %v526_v22  }
 0x34f   :  { %438 = vperm.xlu0 %677, %v432_v23  }
 0x397   :  { %v400_v25 = vpop.permute.xlu2 %399 }
 0x39f   :  { %v532_v31 = vpop.permute.xlu2 %531 }
 0x3b7   :  { %v405_v24 = vpop.permute.xlu1 %404 }
 0x3b8   :  { %644 = vmatpush.msk.msrb.mxu3 %vm172_vm4, %v405_v24 }
 0x3b9   :  { %v444_v26 = vpop.permute.xlu0 %443 }
 0x3ba   :  { %645 = vmatpush.msk.msrb.mxu3 %vm171_vm5, %v400_v25 }
 0x3bb   :  { %646 = vmatmul.msk.f32.vlgmr.msrb.gmra.mxu3 %vm185_vm6, %v758_v37  ;;  %v450_v37 = vstv %s649_s24 }
 0x3bc   :  { %667 = vmatpush.msra.mxu3 %v396_v18 }
 0x3be   :  { %668 = vmatpush.msra.mxu3 %v395_v9 }
 0x3bf   :  { %v537_v35 = vpop.permute.xlu1 %536 }
 0x3c1   :  { %v439_v36 = vpop.permute.xlu0 %438 }
 0x43e   :  { %v426_v28 = vpop.f32.mrf.mxu3 }
 0x43f   :  { %v435_v29 = vmul.f32 %v434_v27, %v426_v28  ;;  %v528_v30 = vmul.f32 %v527_v33, %v426_v28 }
 0x441   :  { %v446_v32 = vperm.slane %v435_v29, 0  ;;  %v539_v34 = vperm.slane %v528_v30, 0 }
 0x443   :  { %v447_v41 = vadd.f32 %v446_v32, %v439_v36  ;;  %v448_v42 = vadd.f32 %v446_v32, %v444_v26  ;;  %v540_v43 = vadd.f32 %v539_v34, %v532_v31  ;;  %v541_v44 = vadd.f32 %v539_v34, %v537_v35 }
 0x445   :  { %v451_v45 = vadd.f32 %v450_v37, %v447_v41  ;;  %v452_v46 = vadd.f32 %v450_v37, %v448_v42  ;;  %v457_v47 = vadd.f32 %v456_v38, %v447_v41  ;;  %v458_v48 = vadd.f32 %v456_v38, %v448_v42 }
 0x446   :  { %v544_v49 = vadd.f32 %v543_v39, %v540_v43  ;;  %v545_v50 = vadd.f32 %v543_v39, %v541_v44  ;;  %v550_v51 = vadd.f32 %v549_v40, %v540_v43  ;;  %v551_v52 = vadd.f32 %v549_v40, %v541_v44 }
 0x447   :  { %v454_v53 = vmul.f32 %v452_v46, %v885_v58  ;;  %v460_v54 = vmul.f32 %v458_v48, %v887_v59  ;;  %v453_v55 = vmul.f32 %v451_v45, %v889_v60  ;;  %v459_v56 = vmul.f32 %v457_v47, %v891_v61 }
 0x448   :  { %v547_v57 = vmul.f32 %v545_v50, %v885_v58  ;;  %v553_v62 = vmul.f32 %v551_v52, %v887_v59  ;;  %v546_v63 = vmul.f32 %v544_v49, %v889_v60  ;;  %v552_v0 = vmul.f32 %v550_v51, %v891_v61 }
 0x449   :  { %v462_v1 = vadd.f32 %v460_v54, %v454_v53  ;;  %v461_v2 = vadd.f32 %v459_v56, %v453_v55 }
 0x44a   :  { %v555_v3 = vadd.f32 %v553_v62, %v547_v57  ;;  %v554_v4 = vadd.f32 %v552_v0, %v546_v63 }
 0x44b   :  { %vm464_vm11 = vcmp.gt.f32.partialorder %v462_v1, 0.0  ;;  %v466_v5 = vmul.f32 0.2, %v462_v1  ;;  %vm463_vm12 = vcmp.gt.f32.partialorder %v461_v2, 0.0  ;;  %v465_v6 = vmul.f32 0.2, %v461_v2 }
 0x44c   :  { %vm557_vm13 = vcmp.gt.f32.partialorder %v555_v3, 0.0  ;;  %v559_v7 = vmul.f32 0.2, %v555_v3  ;;  %v558_v61 = vmul.f32 0.2, %v554_v4  ;;  %vm556_vm14 = vcmp.gt.f32.partialorder %v554_v4, 0.0 }
 0x44d   :  { %v468_v8 = vsel %vm464_vm11, %v462_v1, %v466_v5  ;;  %v467_v9 = vsel %vm463_vm12, %v461_v2, %v465_v6 }
 0x44e   :  { %v561_v10 = vsel %vm557_vm13, %v555_v3, %v559_v7  ;;  %v472_v58 = vsel %vm185_vm6, %v468_v8, -inf  ;;  %v469_v59 = vsel %vm185_vm6, %v467_v9, -inf  ;;  %v560_v11 = vsel %vm556_vm14, %v554_v4, %v558_v61 }
 0x44f   :  { %v565_v60 = vsel %vm185_vm6, %v561_v10, -inf  ;;  %473 = vmax.xlane.f32.xlu1 %v472_v58  ;;  %470 = vmax.xlane.f32.xlu2 %v469_v59  ;;  %v562_v12 = vsel %vm185_vm6, %v560_v11, -inf }
 0x450   :  { %566 = vmax.xlane.f32.xlu0 %v565_v60 }
 0x457   :  { %563 = vmax.xlane.f32.xlu1 %v562_v12 }
 0x4c2   :  { %v474_v13 = vpop.xlane.xlu1 %473  ;;  %v471_v14 = vpop.xlane.xlu2 %470 }
 0x4c3   :  { %v476_v15 = vsub.f32 %v468_v8, %v474_v13  ;;  %v475_v16 = vsub.f32 %v467_v9, %v471_v14  ;;  %v567_v17 = vpop.xlane.xlu0 %566 }
 0x4c4   :  { %v569_v18 = vsub.f32 %v561_v10, %v567_v17 }
 0x4c5   :  { %v479_v19 = vmul.f32 1.442695, %v476_v15  ;;  %v477_v20 = vmul.f32 1.442695, %v475_v16 }
 0x4c6   :  { %v572_v21 = vmul.f32 1.442695, %v569_v18 }
 0x4c7   :  { %698 = vpow2.f32 %v479_v19 }
 0x4c8   :  { %700 = vpow2.f32 %v477_v20 }
 0x4c9   :  { %702 = vpow2.f32 %v572_v21 }
 0x4ca   :  { %v564_v22 = vpop.xlane.xlu1 %563 }
 0x4cb   :  { %v568_v23 = vsub.f32 %v560_v11, %v564_v22 }
 0x4cd   :  { %v699_v24 = vpop.eup %698  ;;  %v570_v25 = vmul.f32 1.442695, %v568_v23 }
 0x4ce   :  { %v701_v26 = vpop.eup %700  ;;  %652 = vmatmul.msk.f32.vlgmr.msra.gmra.mxu3 %vm185_vm6, %v699_v24  ;;  %v513_v27 = vsel %vm185_vm6, %v699_v24, 0.0 }
 0x4cf   :  { %v703_v33 = vpop.eup %702  ;;  %704 = vpow2.f32 %v570_v25  ;;  %651 = vmatmul.msk.f32.vlgmr.msrb.gmra.mxu1 %vm185_vm6, %v701_v26  ;;  %514 = vadd.xlane.f32.xlu2 %v513_v27  ;;  %v510_v28 = vsel %vm185_vm6, %v701_v26, 0.0 }
 0x4d0   :  { %658 = vmatmul.msk.f32.vlgmr.msra.gmra.mxu2 %vm185_vm6, %v703_v33  ;;  %511 = vadd.xlane.f32.xlu0 %v510_v28  ;;  %v606_v31 = vsel %vm185_vm6, %v703_v33, 0.0 }
 0x4d5   :  { %v705_v29 = vpop.eup %704 }
 0x4d6   :  { %657 = vmatmul.msk.f32.vlgmr.msrb.gmra.mxu0 %vm185_vm6, %v705_v29  ;;  %v603_v30 = vsel %vm185_vm6, %v705_v29, 0.0 }
 0x4d7   :  { %604 = vadd.xlane.f32.xlu1 %v603_v30 }
 0x4d8   :  { %607 = vadd.xlane.f32.xlu0 %v606_v31 }
 0x542   :  { %v515_v34 = vpop.xlane.xlu2 %514 }
 0x543   :  { %v512_v32 = vpop.xlane.xlu0 %511  ;;  %706 = vrcp.f32 %v515_v34 }
 0x544   :  { %708 = vrcp.f32 %v512_v32 }
 0x549   :  { %v707_v37 = vpop.eup %706 }
 0x54a   :  { %v605_v35 = vpop.xlane.xlu1 %604  ;;  %v709_v38 = vpop.eup %708 }
 0x54b   :  { %v608_v36 = vpop.xlane.xlu0 %607 }
 0x54c   :  { %710 = vrcp.f32 %v608_v36  ;;  %v504_v39 = vpop.f32.mrf.mxu1 }
 0x54d   :  { %712 = vrcp.f32 %v605_v35  ;;  %v518_v46 = vmul.f32 %v709_v38, %v504_v39 }
 0x551   :  { %v507_v40 = vpop.f32.mrf.mxu3 }
 0x552   :  { %v711_v41 = vpop.eup %710  ;;  %v519_v42 = vmul.f32 %v707_v37, %v507_v40 }
 0x553   :  { %v713_v43 = vpop.eup %712  ;;  %v600_v44 = vpop.f32.mrf.mxu2 }
 0x554   :  { %v597_v45 = vpop.f32.mrf.mxu0  ;;  %v612_v47 = vmul.f32 %v711_v41, %v600_v44 }
 0x555   :  { %v611_v48 = vmul.f32 %v713_v43, %v597_v45 }
 0x556   :  { %v614_v49 = vadd.f32 %v612_v47, %v519_v42 }
 0x557   :  { %v613_v50 = vadd.f32 %v611_v48, %v518_v46 }
 0x558   :  { %v616_v51 = vmul.f32 0.5, %v614_v49 }
 0x559   :  { %v615_v52 = vmul.f32 0.5, %v613_v50 }
 0x55a   :  { %619 = vst.msk [vmem:[%s956_s9 + $0x8] sm:$0xff] %vm617_vm15, %v616_v51 }
 0x55b   :  { %618 = vst.msk [vmem:[%s956_s9] sm:$0xff] %vm617_vm15, %v615_v52 }
 0x55c   :  { %624 = vsyncpa [#allocation4], 1 }
 0x55d   :  { %625 = vsyncpa [#allocation6], 1 }

</bundles_post_ra>
